<compile_context>
chip_gen: v6e
topology: v6e:2x2x1
jax: 0.10.0
libtpu: 0.0.40
codegen_flags: <defaults>
</compile_context>

<pallas_src>
import jax
import jax.numpy as jnp
from jax.experimental import pallas as pl
from jax.experimental.pallas import tpu as pltpu

D_IN = 28 * 28
NUM_CLASSES = 10
PADDED_CLASSES = 128      # lane-dense output width
NEG_PAD = -1e30           # bias for padded class lanes -> exp() underflows to 0


def mlp_kernel(x_ref,
               w1_ref, b1_ref,
               w2_ref, b2_ref,
               w3_ref, b3_ref,
               w4_ref, b4_ref,
               o_ref):
    # One grid step = one batch tile. All four matmuls (MXU), the ReLUs (VPU)
    # and the log-softmax reduction are fused in this body. Weights use
    # constant index_maps so they stay VMEM-resident across grid steps; only
    # the x tile streams from HBM (double-buffered by BlockSpec).
    x = x_ref[...]                                        # (tb, 784) bf16

    h = jnp.dot(x, w1_ref[...],
                preferred_element_type=jnp.float32) + b1_ref[...]
    h = jnp.maximum(h, 0.0)

    h = jnp.dot(h, w2_ref[...].astype(jnp.float32),
                preferred_element_type=jnp.float32) + b2_ref[...]
    h = jnp.maximum(h, 0.0)

    h = jnp.dot(h, w3_ref[...].astype(jnp.float32),
                preferred_element_type=jnp.float32) + b3_ref[...]
    h = jnp.maximum(h, 0.0)

    # fc4 is padded to 128 output lanes: padded lanes have zero weight and a
    # very negative bias, so they contribute exactly 0 to the softmax sum and
    # the output store is a full, unmasked 128-lane store.
    logits = jnp.dot(h, w4_ref[...].astype(jnp.float32),
                     preferred_element_type=jnp.float32) + b4_ref[...]

    m = jnp.max(logits, axis=-1, keepdims=True)
    shifted = logits - m
    lse = jnp.log(jnp.sum(jnp.exp(shifted), axis=-1, keepdims=True))
    o_ref[...] = (shifted - lse).astype(o_ref.dtype)


def _round_up(n, m):
    return ((n + m - 1) // m) * m


def net_forward(x, params, *, batch_tile=512, x_buffer_count=None,
                vmem_limit_bytes=None):
    """Forward pass of the 4-layer MLP + log_softmax.

    x: (B, 784). Cast to bf16 here if it isn't already (ideally callers
    produce bf16 upstream so the cast doesn't add an extra HBM pass).
    params: dict from init_params() (bf16 weights stored (in, out), f32
    biases, fc4 padded to 128 output lanes).

    Tuning knobs:
      batch_tile       : sweep 256-2048 (keep modest on v5e/v7x; on v6e raise
                         together with vmem_limit_bytes for 4096-8192 tiles).
      x_buffer_count   : >2 adds deeper pipelining on the x stream if
                         profiling shows exposed DMA between grid steps.
      vmem_limit_bytes : raise the scoped VMEM limit for big-tile configs.
    """
    B, d_in = x.shape
    assert d_in == D_IN
    if x.dtype != jnp.bfloat16:
        x = x.astype(jnp.bfloat16)

    # Batch tiling (16-row aligned for bf16 sublane packing). Pad ragged
    # batches up to a tile multiple; padded rows are sliced off at the end.
    if B <= batch_tile:
        tb = _round_up(max(B, 1), 16)
    else:
        tb = _round_up(batch_tile, 16)
    n_tiles = pl.cdiv(B, tb)
    b_pad = n_tiles * tb
    if b_pad != B:
        x = jnp.pad(x, ((0, b_pad - B), (0, 0)))

    x_spec_kwargs = {}
    if x_buffer_count is not None and x_buffer_count > 2:
        x_spec_kwargs["pipeline_mode"] = pl.Buffered(x_buffer_count)
    x_spec = pl.BlockSpec((tb, D_IN), lambda i: (i, 0), **x_spec_kwargs)

    def resident(shape):
        # Whole-array block with a constant block index: fetched once and
        # kept resident in VMEM across all grid steps.
        return pl.BlockSpec(shape, lambda i: (0, 0))

    grid_spec = pltpu.PrefetchScalarGridSpec(
        num_scalar_prefetch=0,
        grid=(n_tiles,),
        in_specs=[
            x_spec,
            resident(params["w1"].shape), resident(params["b1"].shape),
            resident(params["w2"].shape), resident(params["b2"].shape),
            resident(params["w3"].shape), resident(params["b3"].shape),
            resident(params["w4"].shape), resident(params["b4"].shape),
        ],
        out_specs=pl.BlockSpec((tb, PADDED_CLASSES), lambda i: (i, 0)),
    )

    compiler_kwargs = dict(dimension_semantics=("parallel",))
    if vmem_limit_bytes is not None:
        compiler_kwargs["vmem_limit_bytes"] = vmem_limit_bytes

    out = pl.pallas_call(
        mlp_kernel,
        out_shape=jax.ShapeDtypeStruct((b_pad, PADDED_CLASSES), jnp.float32),
        grid_spec=grid_spec,
        compiler_params=pltpu.CompilerParams(**compiler_kwargs),
    )(x,
      params["w1"], params["b1"],
      params["w2"], params["b2"],
      params["w3"], params["b3"],
      params["w4"], params["b4"])

    # Drop padded batch rows and padded class lanes.
    return out[:B, :NUM_CLASSES]


def init_params(key):
    """torch.nn.Linear-style init: U(-1/sqrt(fan_in), +1/sqrt(fan_in)).

    Weights are stored as (in, out) bf16 (kernel computes y = x @ W + b);
    fc4's weight/bias are zero-/NEG_PAD-padded to 128 output lanes so the
    kernel's final store is lane-dense.
    """
    dims = [(D_IN, 64), (64, 64), (64, 64), (64, NUM_CLASSES)]
    params = {}
    keys = jax.random.split(key, 2 * len(dims))
    for idx, (fan_in, fan_out) in enumerate(dims):
        bound = 1.0 / jnp.sqrt(jnp.float32(fan_in))
        wk, bk = keys[2 * idx], keys[2 * idx + 1]
        w = jax.random.uniform(wk, (fan_in, fan_out), jnp.float32, -bound, bound)
        b = jax.random.uniform(bk, (1, fan_out), jnp.float32, -bound, bound)
        params[f"w{idx + 1}"] = w.astype(jnp.bfloat16)
        params[f"b{idx + 1}"] = b                     # biases kept f32 (tiny)
    pad = PADDED_CLASSES - NUM_CLASSES
    params["w4"] = jnp.pad(params["w4"], ((0, 0), (0, pad)))
    params["b4"] = jnp.pad(params["b4"], ((0, 0), (0, pad)),
                           constant_values=NEG_PAD)
    return params


def net_forward_ref(x, params):
    """Pure-JAX reference (f32 math on the same bf16-valued inputs/weights)."""
    xf = x.astype(jnp.float32)
    w = lambda k: params[k].astype(jnp.float32)
    h = jnp.maximum(xf @ w("w1") + params["b1"], 0.0)
    h = jnp.maximum(h @ w("w2") + params["b2"], 0.0)
    h = jnp.maximum(h @ w("w3") + params["b3"], 0.0)
    logits = h @ w("w4")[:, :NUM_CLASSES] + params["b4"][:, :NUM_CLASSES]
    return jax.nn.log_softmax(logits, axis=1)


if __name__ == "__main__":
    key = jax.random.PRNGKey(0)
    pkey, xkey1, xkey2 = jax.random.split(key, 3)
    params = init_params(pkey)

    # Small batch (single padded tile).
    B = 8
    x = jax.random.normal(xkey1, (B, D_IN), jnp.float32).astype(jnp.bfloat16)
    out = jax.block_until_ready(net_forward(x, params))
    ref = net_forward_ref(x, params)
    assert out.shape == (B, NUM_CLASSES)
    assert jnp.allclose(out, ref, atol=5e-3, rtol=5e-3), "mismatch vs ref (B=8)"
    # log_softmax rows must sum (in prob space) to ~1 over the 10 real classes
    assert jnp.allclose(jnp.sum(jnp.exp(out), axis=1), 1.0, atol=1e-4)

    # Ragged batch exercising the multi-step pipelined grid (3 tiles of 128,
    # padded 300 -> 384 rows).
    B2 = 300
    x2 = jax.random.normal(xkey2, (B2, D_IN), jnp.float32).astype(jnp.bfloat16)
    out2 = jax.block_until_ready(net_forward(x2, params, batch_tile=128))
    ref2 = net_forward_ref(x2, params)
    assert out2.shape == (B2, NUM_CLASSES)
    assert jnp.allclose(out2, ref2, atol=5e-3, rtol=5e-3), "mismatch vs ref (B=300)"

    print("KERNEL_OK")
</pallas_src>

<mosaic_0001>
module attributes {stable_mosaic.version = 11 : i64} {
  func.func @mlp_kernel(%arg0: i32, %arg1: memref<16x784xbf16, #tpu.memory_space<vmem>>, %arg2: memref<784x64xbf16, #tpu.memory_space<vmem>>, %arg3: memref<1x64xf32, #tpu.memory_space<vmem>>, %arg4: memref<64x64xbf16, #tpu.memory_space<vmem>>, %arg5: memref<1x64xf32, #tpu.memory_space<vmem>>, %arg6: memref<64x64xbf16, #tpu.memory_space<vmem>>, %arg7: memref<1x64xf32, #tpu.memory_space<vmem>>, %arg8: memref<64x128xbf16, #tpu.memory_space<vmem>>, %arg9: memref<1x128xf32, #tpu.memory_space<vmem>>, %arg10: memref<16x128xf32, #tpu.memory_space<vmem>>) attributes {dimension_semantics = [#tpu.dimension_semantics<parallel>], iteration_bounds = array<i64: 1>, scalar_prefetch = 0 : i64, scratch_operands = 0 : i64, tpu.core_type = #tpu.core_type<tc>, window_params = [{transform_indices = @transform_0, window_bounds = array<i64: 16, 784>}, {pipeline_mode = #tpu.pipeline_mode<synchronous>, transform_indices = @transform_1, window_bounds = array<i64: 784, 64>}, {pipeline_mode = #tpu.pipeline_mode<synchronous>, transform_indices = @transform_2, window_bounds = array<i64: 1, 64>}, {pipeline_mode = #tpu.pipeline_mode<synchronous>, transform_indices = @transform_3, window_bounds = array<i64: 64, 64>}, {pipeline_mode = #tpu.pipeline_mode<synchronous>, transform_indices = @transform_4, window_bounds = array<i64: 1, 64>}, {pipeline_mode = #tpu.pipeline_mode<synchronous>, transform_indices = @transform_5, window_bounds = array<i64: 64, 64>}, {pipeline_mode = #tpu.pipeline_mode<synchronous>, transform_indices = @transform_6, window_bounds = array<i64: 1, 64>}, {pipeline_mode = #tpu.pipeline_mode<synchronous>, transform_indices = @transform_7, window_bounds = array<i64: 64, 128>}, {pipeline_mode = #tpu.pipeline_mode<synchronous>, transform_indices = @transform_8, window_bounds = array<i64: 1, 128>}, {transform_indices = @transform_9, window_bounds = array<i64: 16, 128>}]} {
    %c0 = arith.constant 0 : index
    %c0_0 = arith.constant 0 : index
    %0 = vector.load %arg1[%c0, %c0_0] : memref<16x784xbf16, #tpu.memory_space<vmem>>, vector<16x784xbf16>
    %c0_1 = arith.constant 0 : index
    %c0_2 = arith.constant 0 : index
    %1 = vector.load %arg2[%c0_1, %c0_2] : memref<784x64xbf16, #tpu.memory_space<vmem>>, vector<784x64xbf16>
    %cst = arith.constant dense<0.000000e+00> : vector<16x64xf32>
    %2 = tpu.matmul %0, %1, %cst {dimension_numbers = #tpu.dot_dimension_numbers<[1], [0], [0], [1], [0, 0, 1, 1], [], []>} : vector<16x784xbf16>, vector<784x64xbf16>, vector<16x64xf32> -> vector<16x64xf32>
    %c0_3 = arith.constant 0 : index
    %c0_4 = arith.constant 0 : index
    %3 = vector.load %arg3[%c0_3, %c0_4] : memref<1x64xf32, #tpu.memory_space<vmem>>, vector<1x64xf32>
    %4 = vector.broadcast %3 : vector<1x64xf32> to vector<16x64xf32>
    %5 = arith.addf %2, %4 : vector<16x64xf32>
    %cst_5 = arith.constant 0.000000e+00 : f32
    %6 = vector.broadcast %cst_5 : f32 to vector<16x64xf32>
    %7 = arith.maximumf %5, %6 : vector<16x64xf32>
    %c0_6 = arith.constant 0 : index
    %c0_7 = arith.constant 0 : index
    %8 = vector.load %arg4[%c0_6, %c0_7] : memref<64x64xbf16, #tpu.memory_space<vmem>>, vector<64x64xbf16>
    %9 = arith.extf %8 : vector<64x64xbf16> to vector<64x64xf32>
    %cst_8 = arith.constant dense<0.000000e+00> : vector<16x64xf32>
    %10 = tpu.matmul %7, %9, %cst_8 {dimension_numbers = #tpu.dot_dimension_numbers<[1], [0], [0], [1], [0, 0, 1, 1], [], []>} : vector<16x64xf32>, vector<64x64xf32>, vector<16x64xf32> -> vector<16x64xf32>
    %c0_9 = arith.constant 0 : index
    %c0_10 = arith.constant 0 : index
    %11 = vector.load %arg5[%c0_9, %c0_10] : memref<1x64xf32, #tpu.memory_space<vmem>>, vector<1x64xf32>
    %12 = vector.broadcast %11 : vector<1x64xf32> to vector<16x64xf32>
    %13 = arith.addf %10, %12 : vector<16x64xf32>
    %cst_11 = arith.constant 0.000000e+00 : f32
    %14 = vector.broadcast %cst_11 : f32 to vector<16x64xf32>
    %15 = arith.maximumf %13, %14 : vector<16x64xf32>
    %c0_12 = arith.constant 0 : index
    %c0_13 = arith.constant 0 : index
    %16 = vector.load %arg6[%c0_12, %c0_13] : memref<64x64xbf16, #tpu.memory_space<vmem>>, vector<64x64xbf16>
    %17 = arith.extf %16 : vector<64x64xbf16> to vector<64x64xf32>
    %cst_14 = arith.constant dense<0.000000e+00> : vector<16x64xf32>
    %18 = tpu.matmul %15, %17, %cst_14 {dimension_numbers = #tpu.dot_dimension_numbers<[1], [0], [0], [1], [0, 0, 1, 1], [], []>} : vector<16x64xf32>, vector<64x64xf32>, vector<16x64xf32> -> vector<16x64xf32>
    %c0_15 = arith.constant 0 : index
    %c0_16 = arith.constant 0 : index
    %19 = vector.load %arg7[%c0_15, %c0_16] : memref<1x64xf32, #tpu.memory_space<vmem>>, vector<1x64xf32>
    %20 = vector.broadcast %19 : vector<1x64xf32> to vector<16x64xf32>
    %21 = arith.addf %18, %20 : vector<16x64xf32>
    %cst_17 = arith.constant 0.000000e+00 : f32
    %22 = vector.broadcast %cst_17 : f32 to vector<16x64xf32>
    %23 = arith.maximumf %21, %22 : vector<16x64xf32>
    %c0_18 = arith.constant 0 : index
    %c0_19 = arith.constant 0 : index
    %24 = vector.load %arg8[%c0_18, %c0_19] : memref<64x128xbf16, #tpu.memory_space<vmem>>, vector<64x128xbf16>
    %25 = arith.extf %24 : vector<64x128xbf16> to vector<64x128xf32>
    %cst_20 = arith.constant dense<0.000000e+00> : vector<16x128xf32>
    %26 = tpu.matmul %23, %25, %cst_20 {dimension_numbers = #tpu.dot_dimension_numbers<[1], [0], [0], [1], [0, 0, 1, 1], [], []>} : vector<16x64xf32>, vector<64x128xf32>, vector<16x128xf32> -> vector<16x128xf32>
    %c0_21 = arith.constant 0 : index
    %c0_22 = arith.constant 0 : index
    %27 = vector.load %arg9[%c0_21, %c0_22] : memref<1x128xf32, #tpu.memory_space<vmem>>, vector<1x128xf32>
    %28 = vector.broadcast %27 : vector<1x128xf32> to vector<16x128xf32>
    %29 = arith.addf %26, %28 : vector<16x128xf32>
    %cst_23 = arith.constant dense<0xFF800000> : vector<16xf32>
    %30 = vector.multi_reduction <maximumf>, %29, %cst_23 [1] : vector<16x128xf32> to vector<16xf32>
    %31 = vector.shape_cast %30 : vector<16xf32> to vector<16x1xf32>
    %32 = vector.broadcast %31 : vector<16x1xf32> to vector<16x128xf32>
    %33 = arith.subf %29, %32 : vector<16x128xf32>
    %34 = math.exp %33 : vector<16x128xf32>
    %cst_24 = arith.constant dense<0.000000e+00> : vector<16xf32>
    %35 = vector.multi_reduction <add>, %34, %cst_24 [1] : vector<16x128xf32> to vector<16xf32>
    %36 = vector.shape_cast %35 : vector<16xf32> to vector<16x1xf32>
    %37 = math.log %36 : vector<16x1xf32>
    %38 = vector.broadcast %37 : vector<16x1xf32> to vector<16x128xf32>
    %39 = arith.subf %33, %38 : vector<16x128xf32>
    %c0_25 = arith.constant 0 : index
    %c0_26 = arith.constant 0 : index
    %40 = vector.load %arg10[%c0_25, %c0_26] : memref<16x128xf32, #tpu.memory_space<vmem>>, vector<16x128xf32>
    tpu.vector_store %arg10[%c0_25, %c0_26], %39 {strides = array<i32>} : memref<16x128xf32, #tpu.memory_space<vmem>>, vector<16x128xf32>,
    return
  }
  func.func @transform_0(%arg0: i32) -> (i32, i32) {
    %c0_i32 = arith.constant 0 : i32
    %c0_i32_0 = arith.constant 0 : i32
    return %arg0, %c0_i32 : i32, i32
  }
  func.func @transform_1(%arg0: i32) -> (i32, i32) {
    %c0_i32 = arith.constant 0 : i32
    %c0_i32_0 = arith.constant 0 : i32
    %c0_i32_1 = arith.constant 0 : i32
    return %c0_i32, %c0_i32_0 : i32, i32
  }
  func.func @transform_2(%arg0: i32) -> (i32, i32) {
    %c0_i32 = arith.constant 0 : i32
    %c0_i32_0 = arith.constant 0 : i32
    %c0_i32_1 = arith.constant 0 : i32
    return %c0_i32, %c0_i32_0 : i32, i32
  }
  func.func @transform_3(%arg0: i32) -> (i32, i32) {
    %c0_i32 = arith.constant 0 : i32
    %c0_i32_0 = arith.constant 0 : i32
    %c0_i32_1 = arith.constant 0 : i32
    return %c0_i32, %c0_i32_0 : i32, i32
  }
  func.func @transform_4(%arg0: i32) -> (i32, i32) {
    %c0_i32 = arith.constant 0 : i32
    %c0_i32_0 = arith.constant 0 : i32
    %c0_i32_1 = arith.constant 0 : i32
    return %c0_i32, %c0_i32_0 : i32, i32
  }
  func.func @transform_5(%arg0: i32) -> (i32, i32) {
    %c0_i32 = arith.constant 0 : i32
    %c0_i32_0 = arith.constant 0 : i32
    %c0_i32_1 = arith.constant 0 : i32
    return %c0_i32, %c0_i32_0 : i32, i32
  }
  func.func @transform_6(%arg0: i32) -> (i32, i32) {
    %c0_i32 = arith.constant 0 : i32
    %c0_i32_0 = arith.constant 0 : i32
    %c0_i32_1 = arith.constant 0 : i32
    return %c0_i32, %c0_i32_0 : i32, i32
  }
  func.func @transform_7(%arg0: i32) -> (i32, i32) {
    %c0_i32 = arith.constant 0 : i32
    %c0_i32_0 = arith.constant 0 : i32
    %c0_i32_1 = arith.constant 0 : i32
    return %c0_i32, %c0_i32_0 : i32, i32
  }
  func.func @transform_8(%arg0: i32) -> (i32, i32) {
    %c0_i32 = arith.constant 0 : i32
    %c0_i32_0 = arith.constant 0 : i32
    %c0_i32_1 = arith.constant 0 : i32
    return %c0_i32, %c0_i32_0 : i32, i32
  }
  func.func @transform_9(%arg0: i32) -> (i32, i32) {
    %c0_i32 = arith.constant 0 : i32
    %c0_i32_0 = arith.constant 0 : i32
    return %arg0, %c0_i32 : i32, i32
  }
}

</mosaic_0001>

<bundles_post_ra>
// kernel: tpu_custom_call.1
= control target key start
LH: loop header
LB: loop body
LE: loop exit
PB: predicated region body
PF: predicated region fallthrough
CT: control target
= control target key end

     0   :  { %v1380_v38 = vmov 0.0   ;;  %vm1381_vm0 = vmmov 0   ;;  %vm476_vm1 = vcmask 130048   ;;  %s1660_s0 = inlined_call_operand.vmem [shape: bf16[16,784], index: 0, kind: input, shape index: {}]   ;;  %s1661_s1 = inlined_call_operand.vmem [shape: bf16[784,64], index: 1, kind: input, shape index: {}]   ;;  %s1662_s2 = inlined_call_operand.vmem [shape: f32[1,64], index: 2, kind: input, shape index: {}]   ;;  %s1663_s3 = inlined_call_operand.vmem [shape: bf16[64,64], index: 3, kind: input, shape index: {}]   ;;  %s1664_s4 = inlined_call_operand.vmem [shape: f32[1,64], index: 4, kind: input, shape index: {}]   ;;  %s1665_s5 = inlined_call_operand.vmem [shape: bf16[64,64], index: 5, kind: input, shape index: {}]   ;;  %s1666_s6 = inlined_call_operand.vmem [shape: f32[1,64], index: 6, kind: input, shape index: {}]   ;;  %s1667_s7 = inlined_call_operand.vmem [shape: bf16[64,128], index: 7, kind: input, shape index: {}]   ;;  %s1668_s8 = inlined_call_operand.vmem [shape: f32[1,128], index: 8, kind: input, shape index: {}]   ;;  %s1669_s9 = inlined_call_operand.hbm [shape: f32[16,128], index: 9, kind: output, shape index: {}]  }
   0x1   :  { %v1291_v0 = vld [vmem:[%s1661_s1 + $0x78] sm:$0xff]   ;;  %v1295_v4 = vld [vmem:[%s1661_s1 + $0x70] sm:$0xff]   ;;  %v1299_v8 = vld [vmem:[%s1661_s1 + $0x68] sm:$0xff]  }
   0x2   :  { %v1292_v1 = vld [vmem:[%s1661_s1 + $0x38] sm:$0xff]   ;;  %1125 = vmatprep.subr.bf16.mxu0 %v1291_v0  ;;  %v1296_v5 = vld [vmem:[%s1661_s1 + $0x30] sm:$0xff]   ;;  %v1300_v9 = vld [vmem:[%s1661_s1 + $0x28] sm:$0xff]  }
   0x3   :  { %v1293_v2 = vld [vmem:[%s1661_s1 + $0xf8] sm:$0xff]   ;;  %1126 = vmatpush3.bf16.msra.mxu0 %v1292_v1  ;;  %v1297_v6 = vld [vmem:[%s1661_s1 + $0xf0] sm:$0xff]   ;;  %v1301_v10 = vld [vmem:[%s1661_s1 + $0xe8] sm:$0xff]  }
   0x4   :  { %v1294_v3 = vld [vmem:[%s1661_s1 + $0xb8] sm:$0xff]   ;;  %1147 = vmatprep.subr.bf16.mxu1 %v1293_v2  ;;  %1127 = vmatprep.subr.bf16.mxu0 %v1295_v4  ;;  %v1298_v7 = vld [vmem:[%s1661_s1 + $0xb0] sm:$0xff]   ;;  %v1302_v11 = vld [vmem:[%s1661_s1 + $0xa8] sm:$0xff]  }
   0x5   :  { %1148 = vmatpush3.bf16.msra.mxu1 %v1294_v3  ;;  %v1303_v12 = vld [vmem:[%s1661_s1 + $0x60] sm:$0xff]   ;;  %v1307_v16 = vld [vmem:[%s1661_s1 + $0x58] sm:$0xff]   ;;  %v1311_v20 = vld [vmem:[%s1661_s1 + $0x50] sm:$0xff]  }
   0x6   :  { %1149 = vmatprep.subr.bf16.mxu1 %v1297_v6  ;;  %v1304_v13 = vld [vmem:[%s1661_s1 + $0x20] sm:$0xff]   ;;  %v1308_v17 = vld [vmem:[%s1661_s1 + $0x18] sm:$0xff]   ;;  %v1312_v21 = vld [vmem:[%s1661_s1 + $0x10] sm:$0xff]  }
   0x7   :  { %1128 = vmatpush3.bf16.msra.mxu0 %v1296_v5  ;;  %v1305_v14 = vld [vmem:[%s1661_s1 + $0xe0] sm:$0xff]   ;;  %v1309_v18 = vld [vmem:[%s1661_s1 + $0xd8] sm:$0xff]   ;;  %v1313_v22 = vld [vmem:[%s1661_s1 + $0xd0] sm:$0xff]  }
   0x8   :  { %1129 = vmatprep.subr.bf16.mxu0 %v1299_v8  ;;  %v1306_v15 = vld [vmem:[%s1661_s1 + $0xa0] sm:$0xff]   ;;  %v1310_v19 = vld [vmem:[%s1661_s1 + $0x98] sm:$0xff]   ;;  %v1314_v23 = vld [vmem:[%s1661_s1 + $0x90] sm:$0xff]  }
   0x9   :  { %1150 = vmatpush3.bf16.msra.mxu1 %v1298_v7  ;;  %v1315_v24 = vld [vmem:[%s1661_s1 + $0x48] sm:$0xff]   ;;  %v1319_v28 = vld [vmem:[%s1661_s1 + $0x40] sm:$0xff]   ;;  %v1326_v34 = vld [vmem:[%s1661_s1 + $0x178] sm:$0xff]  }
   0xa   :  { %1151 = vmatprep.subr.bf16.mxu1 %v1301_v10  ;;  %v1316_v25 = vld [vmem:[%s1661_s1 + $0x8] sm:$0xff]   ;;  %v1320_v29 = vld [vmem:[%s1661_s1] sm:$0xff]   ;;  %v1330_v37 = vld [vmem:[%s1661_s1 + $0x138] sm:$0xff]  }
   0xb   :  { %1130 = vmatpush3.bf16.msra.mxu0 %v1300_v9  ;;  %v1317_v26 = vld [vmem:[%s1661_s1 + $0xc8] sm:$0xff]   ;;  %v1321_v30 = vld [vmem:[%s1661_s1 + $0xc0] sm:$0xff]   ;;  %v1331_v39 = vld [vmem:[%s1661_s1 + $0x170] sm:$0xff]  }
   0xc   :  { %1131 = vmatprep.subr.bf16.mxu0 %v1303_v12  ;;  %v1318_v27 = vld [vmem:[%s1661_s1 + $0x88] sm:$0xff]   ;;  %v1322_v31 = vld [vmem:[%s1660_s0] ss:$28 sps:$4 sm:$0xff]   ;;  %v1332_v40 = vld [vmem:[%s1661_s1 + $0x130] sm:$0xff]  }
   0xd   :  { %1152 = vmatpush3.bf16.msra.mxu1 %v1302_v11  ;;  %v1324_v32 = vld [vmem:[%s1660_s0 + $0x4] ss:$28 sps:$4 sm:$0xff]   ;;  %v1329_v36 = vld [vmem:[%s1660_s0 + $0xc] ss:$28 sps:$4 sm:$0xff]   ;;  %v1337_v45 = vld [vmem:[%s1661_s1 + $0x158] sm:$0xff]  }
   0xe   :  { %1153 = vmatprep.subr.bf16.mxu1 %v1305_v14  ;;  %v1325_v33 = vld [vmem:[%s1661_s1 + $0x80] sm:$0xff]   ;;  %512 = vmatprep.mubr.bf16.mxu0 %v1324_v32  ;;  %v1333_v41 = vld [vmem:[%s1661_s1 + $0x168] sm:$0xff]   ;;  %v1338_v46 = vld [vmem:[%s1661_s1 + $0x118] sm:$0xff]  }
   0xf   :  { %1132 = vmatpush3.bf16.msra.mxu0 %v1304_v13  ;;  %v1327_v35 = vld [vmem:[%s1660_s0 + $0x8] ss:$28 sps:$4 sm:$0xff]   ;;  %553 = vmatprep.mubr.bf16.mxu1 %v1329_v36  ;;  %v1339_v47 = vld [vmem:[%s1661_s1 + $0x150] sm:$0xff]  }
  0x10   :  { %1133 = vmatprep.subr.bf16.mxu0 %v1307_v16  ;;  %v1334_v42 = vld [vmem:[%s1661_s1 + $0x128] sm:$0xff]   ;;  %v1335_v43 = vld [vmem:[%s1661_s1 + $0x160] sm:$0xff]   ;;  %v1348_v49 = vld [vmem:[%s1660_s0 + $0x14] ss:$28 sps:$4 sm:$0xff]  }
  0x11   :  { %1154 = vmatpush3.bf16.msra.mxu1 %v1306_v15  ;;  %v1336_v44 = vld [vmem:[%s1661_s1 + $0x120] sm:$0xff]   ;;  %v1349_v50 = vld [vmem:[%s1660_s0 + $0x18] ss:$28 sps:$4 sm:$0xff]  }
  0x12   :  { %1155 = vmatprep.subr.bf16.mxu1 %v1309_v18  ;;  %v1345_v48 = vld [vmem:[%s1661_s1 + $0x180] sm:$0xff]   ;;  %v1340_v51 = vld [vmem:[%s1661_s1 + $0x110] sm:$0xff]  }
  0x13   :  { %1134 = vmatpush3.bf16.msra.mxu0 %v1308_v17 }
  0x14   :  { %1135 = vmatprep.subr.bf16.mxu0 %v1311_v20 }
  0x15   :  { %1156 = vmatpush3.bf16.msra.mxu1 %v1310_v19 }
  0x16   :  { %1157 = vmatprep.subr.bf16.mxu1 %v1313_v22 }
  0x17   :  { %1136 = vmatpush3.bf16.msra.mxu0 %v1312_v21 }
  0x18   :  { %1137 = vmatprep.subr.bf16.mxu0 %v1315_v24 }
  0x19   :  { %1158 = vmatpush3.bf16.msra.mxu1 %v1314_v23 }
  0x1a   :  { %1159 = vmatprep.subr.bf16.mxu1 %v1317_v26 }
  0x1b   :  { %1138 = vmatpush3.bf16.msra.mxu0 %v1316_v25 }
  0x1c   :  { %1139 = vmatprep.subr.bf16.mxu0 %v1319_v28 }
  0x1d   :  { %1160 = vmatpush3.bf16.msra.mxu1 %v1318_v27 }
  0x1e   :  { %1161 = vmatprep.subr.bf16.mxu1 %v1321_v30 }
  0x1f   :  { %1140 = vmatpush3.bf16.msra.mxu0 %v1320_v29 }
  0x20   :  { %1169 = vmatprep.subr.bf16.mxu0 %v1326_v34 }
  0x21   :  { %1162 = vmatpush3.bf16.msra.mxu1 %v1325_v33 }
  0x22   :  { %513 = vmatmul.mubr.bf16.vlgmr.msra.gmra.mxu0 %v1322_v31  ;;  %1223 = vmatprep.subr.bf16.mxu1 %v1380_v38 }
  0x23   :  { %1170 = vmatpush3.bf16.msra.mxu0 %v1330_v37  ;;  %594 = vmatprep.mubr.bf16.mxu0 %v1348_v49 }
  0x24   :  { %554 = vmatmul.mubr.bf16.vlgmr.msra.gmra.mxu1 %v1327_v35  ;;  %1171 = vmatprep.subr.bf16.mxu0 %v1331_v39 }
  0x25   :  { %1225 = vmatprep.mubr.msk.bf16.mxu1 %vm1381_vm0, %v1380_v38  ;;  %1224 = vmatpush3.bf16.msra.mxu1 %v1345_v48 }
  0x27   :  { %1172 = vmatpush3.bf16.msra.mxu0 %v1332_v40 }
  0x28   :  { %1173 = vmatprep.subr.bf16.mxu0 %v1333_v41 }
  0x2b   :  { %1174 = vmatpush3.bf16.msra.mxu0 %v1334_v42 }
  0x2c   :  { %1175 = vmatprep.subr.bf16.mxu0 %v1335_v43 }
  0x2f   :  { %1176 = vmatpush3.bf16.msra.mxu0 %v1336_v44 }
  0x30   :  { %1177 = vmatprep.subr.bf16.mxu0 %v1337_v45 }
  0x33   :  { %1178 = vmatpush3.bf16.msra.mxu0 %v1338_v46 }
  0x34   :  { %14 = vsyncpa [#allocation3], 0  ;;  %1179 = vmatprep.subr.bf16.mxu0 %v1339_v47  ;;  %v1341_v52 = vld [vmem:[%s1661_s1 + $0x148] sm:$0xff]   ;;  %1226 = vmatmul.mubr.msk.bf16.vlgmr.msra.gmra.mxu1 %vm476_vm1, %v1349_v50  ;;  %v1343_v54 = vld [vmem:[%s1661_s1 + $0x140] sm:$0xff]   ;;  %vm669_vm2 = vcmask 523264  }
  0x35   :  { %v1342_v53 = vld [vmem:[%s1661_s1 + $0x108] sm:$0xff]   ;;  %v1344_v55 = vld [vmem:[%s1661_s1 + $0x100] sm:$0xff]   ;;  %v1118_v57 = vld [vmem:[%s1663_s3 + $0x18] sm:$0xff]  }
  0x36   :  { %v1346_v56 = vld [vmem:[%s1660_s0 + $0x10] ss:$28 sps:$4 sm:$0xff]   ;;  %v1083_v58 = vunpack.c.h.bf16 %v1118_v57  ;;  %v1082_v59 = vunpack.c.l.bf16 %v1118_v57  ;;  %v1069_v2 = vld [vmem:[%s1663_s3] sm:$0xff]   ;;  %v1121_v5 = vld [vmem:[%s1665_s5 + $0x18] sm:$0xff]  }
  0x37   :  { %1180 = vmatpush3.bf16.msra.mxu0 %v1340_v51  ;;  %v1117_v60 = vld [vmem:[%s1663_s3 + $0x10] sm:$0xff]   ;;  %v1116_v63 = vld [vmem:[%s1663_s3 + $0x8] sm:$0xff]   ;;  %v1071_v3 = vunpack.c.h.bf16 %v1069_v2  ;;  %v1070_v4 = vunpack.c.l.bf16 %v1069_v2  ;;  %v1099_v6 = vunpack.c.h.bf16 %v1121_v5  ;;  %v1001_v19 = vld [vmem:[%s1662_s2] ss:$0 sm:$0xff]  ;;  %v1098_v41 = vunpack.c.l.bf16 %v1121_v5 }
  0x38   :  { %1181 = vmatprep.subr.bf16.mxu0 %v1341_v52  ;;  %1229 = vmatprep.subr.mxu1 %v1083_v58  ;;  %v1079_v61 = vunpack.c.h.bf16 %v1117_v60  ;;  %v1078_v62 = vunpack.c.l.bf16 %v1117_v60  ;;  %v1075_v0 = vunpack.c.h.bf16 %v1116_v63  ;;  %v1074_v1 = vunpack.c.l.bf16 %v1116_v63  ;;  %v1120_v39 = vld [vmem:[%s1665_s5 + $0x10] sm:$0xff]   ;;  %v1119_v44 = vld [vmem:[%s1665_s5 + $0x8] sm:$0xff]   ;;  %v1085_v47 = vld [vmem:[%s1665_s5] sm:$0xff]  }
  0x39   :  { %1230 = vmatpush3.msra.mxu1 %v1083_v58  ;;  %v1095_v42 = vunpack.c.h.bf16 %v1120_v39  ;;  %v1094_v43 = vunpack.c.l.bf16 %v1120_v39  ;;  %v1091_v45 = vunpack.c.h.bf16 %v1119_v44  ;;  %v1090_v46 = vunpack.c.l.bf16 %v1119_v44  ;;  %v1124_v50 = vld [vmem:[%s1667_s7 + $0x18] sm:$0xff]   ;;  %v1123_v51 = vld [vmem:[%s1667_s7 + $0x10] sm:$0xff]   ;;  %v1122_v63 = vld [vmem:[%s1667_s7 + $0x8] sm:$0xff]  }
  0x3a   :  { %1231 = vmatprep.subr.mxu1 %v1082_v59  ;;  %v1087_v48 = vunpack.c.h.bf16 %v1085_v47  ;;  %v1086_v49 = vunpack.c.l.bf16 %v1085_v47  ;;  %v1115_v52 = vunpack.c.h.bf16 %v1124_v50  ;;  %v1101_v2 = vld [vmem:[%s1667_s7] sm:$0xff]  }
  0x3b   :  { %1182 = vmatpush3.bf16.msra.mxu0 %v1342_v53  ;;  %1232 = vmatpush3.msra.mxu1 %v1082_v59  ;;  %v1114_v53 = vunpack.c.l.bf16 %v1124_v50  ;;  %v1062_v5 = vld [vmem:[%s1666_s6] ss:$0 sm:$0xff]  ;;  %s1382_s6 = smov [#allocation2]  }
  0x3c   :  { %1183 = vmatprep.subr.bf16.mxu0 %v1343_v54  ;;  %1233 = vmatprep.subr.mxu1 %v1079_v61  ;;  %v1111_v54 = vunpack.c.h.bf16 %v1123_v51 }
  0x3d   :  { %1234 = vmatpush3.msra.mxu1 %v1079_v61 }
  0x3e   :  { %1235 = vmatprep.subr.mxu1 %v1078_v62 }
  0x3f   :  { %1184 = vmatpush3.bf16.msra.mxu0 %v1344_v55  ;;  %1236 = vmatpush3.msra.mxu1 %v1078_v62  ;;  %v1110_v55 = vunpack.c.l.bf16 %v1123_v51 }
  0x40   :  { %1237 = vmatprep.subr.mxu1 %v1075_v0  ;;  %1267 = vmatprep.subr.mxu0 %v1115_v52 }
  0x41   :  { %1238 = vmatpush3.msra.mxu1 %v1075_v0  ;;  %v1107_v0 = vunpack.c.h.bf16 %v1122_v63 }
  0x42   :  { %595 = vmatmul.mubr.bf16.vlgmr.msra.gmra.mxu0 %v1346_v56  ;;  %1239 = vmatprep.subr.mxu1 %v1074_v1  ;;  %v1059_v56 = vld [vmem:[%s1664_s4] ss:$0 sm:$0xff] }
  0x43   :  { %1240 = vmatpush3.msra.mxu1 %v1074_v1  ;;  %1268 = vmatpush3.msra.mxu0 %v1115_v52  ;;  %v1106_v1 = vunpack.c.l.bf16 %v1122_v63 }
  0x44   :  { %1241 = vmatprep.subr.mxu1 %v1071_v3  ;;  %1269 = vmatprep.subr.mxu0 %v1114_v53 }
  0x45   :  { %1242 = vmatpush3.msra.mxu1 %v1071_v3  ;;  %1270 = vmatpush3.msra.mxu0 %v1114_v53  ;;  %v1103_v3 = vunpack.c.h.bf16 %v1101_v2 }
  0x46   :  { %1243 = vmatprep.subr.mxu1 %v1070_v4  ;;  %1271 = vmatprep.subr.mxu0 %v1111_v54 }
  0x47   :  { %1244 = vmatpush3.msra.mxu1 %v1070_v4  ;;  %1272 = vmatpush3.msra.mxu0 %v1111_v54  ;;  %v1102_v4 = vunpack.c.l.bf16 %v1101_v2 }
  0x48   :  { %1248 = vmatprep.subr.mxu1 %v1099_v6  ;;  %1273 = vmatprep.subr.mxu0 %v1110_v55 }
  0x49   :  { %1274 = vmatpush3.msra.mxu0 %v1110_v55 }
  0x4a   :  { %1275 = vmatprep.subr.mxu0 %v1107_v0 }
  0x4b   :  { %1276 = vmatpush3.msra.mxu0 %v1107_v0 }
  0x4c   :  { %1277 = vmatprep.subr.mxu0 %v1106_v1 }
  0x4d   :  { %1278 = vmatpush3.msra.mxu0 %v1106_v1 }
  0x4e   :  { %1279 = vmatprep.subr.mxu0 %v1103_v3 }
  0x4f   :  { %1280 = vmatpush3.msra.mxu0 %v1103_v3 }
  0x50   :  { %1281 = vmatprep.subr.mxu0 %v1102_v4 }
  0x51   :  { %1282 = vmatpush3.msra.mxu0 %v1102_v4 }
  0xe2   :  { %v1141_v10 = vpop.f32.mrf.mxu0 }
  0xe4   :  { %v1163_v7 = vpop.f32.mrf.mxu1  ;;  %v1142_v13 = vpop.f32.mrf.mxu0 }
  0xe5   :  { %v1143_v18 = vadd.f32 %v1142_v13, %v1141_v10  ;;  %v1065_v13 = vld [vmem:[%s1668_s8] ss:$0 sm:$0xff]  ;;  %s990_s8 = sshll.u32 %s1382_s6, 4  ;;  %s991_s8 = int_to_ptr.vmem [resolvable:$true] %s990_s8 }
  0xe6   :  { %v1164_v8 = vpop.f32.mrf.mxu1  ;;  %v1144_v16 = vpop.f32.mrf.mxu0  ;;  %s1358_s0 = scalar_lea.vmem %s991_s8, 256  ;;  %p1363_p1 = scmp.lt.s32.totalorder %s991_s8, %s991_s8 }
  0xe7   :  { %v515_v21 = vadd.f32 %v1143_v18, %v1001_v19  ;;  %v1165_v22 = vadd.f32 %v1164_v8, %v1163_v7  ;;  %p1359_p0 = scmp.ne.s32.totalorder %s991_s8, %s1358_s0  ;;  %p1364_p2 = scmp.lt.s32.totalorder %s1358_s0, %s1358_s0 }
  0xe8   :  { %v1166_v9 = vpop.f32.mrf.mxu1  ;;  %v1145_v20 = vpop.f32.mrf.mxu0 }
  0xe9   :  { %v1146_v23 = vadd.f32 %v1145_v20, %v1144_v16  ;;  %v556_v26 = vadd.f32 %v1165_v22, %v515_v21  ;;  %p1365_p3 = por %p1364_p2, %p1363_p1 }
  0xea   :  { %v1167_v11 = vpop.f32.mrf.mxu1 }
  0xeb   :  { %v518_v27 = vadd.f32 %v1146_v23, %v1001_v19  ;;  %v1168_v28 = vadd.f32 %v1167_v11, %v1166_v9  ;;  %p1366_p4 = pnand %p1365_p3, %p1359_p0 }
  0xed   :  { %v559_v33 = vadd.f32 %v1168_v28, %v518_v27 }
  0xf4   :  { %v637_v12 = vpop.f32.mrf.mxu1 }
  0xf6   :  { %v1227_v14 = vpop.f32.mrf.mxu1 }
  0xf8   :  { %v640_v15 = vpop.f32.mrf.mxu1 }
  0xfa   :  { %v1228_v17 = vpop.f32.mrf.mxu1 }
 0x102   :  { %v1185_v24 = vpop.f32.mrf.mxu0 }
 0x104   :  { %v1186_v25 = vpop.f32.mrf.mxu0 }
 0x105   :  { %v1187_v29 = vadd.f32 %v1186_v25, %v1185_v24 }
 0x106   :  { %v1188_v30 = vpop.f32.mrf.mxu0 }
 0x107   :  { %v597_v31 = vadd.f32 %v1187_v29, %v556_v26 }
 0x108   :  { %v1189_v32 = vpop.f32.mrf.mxu0 }
 0x109   :  { %v638_v34 = vadd.f32 %v637_v12, %v597_v31  ;;  %v1190_v35 = vadd.f32 %v1189_v32, %v1188_v30 }
 0x10b   :  { %v644_v36 = vmax.f32 %v638_v34, 0.0  ;;  %v600_v37 = vadd.f32 %v1190_v35, %v559_v33 }
 0x10d   :  { %v641_v38 = vadd.f32 %v640_v15, %v600_v37  ;;  %1245 = vmatprep.mubr.msk.f32.mxu1 %vm669_vm2, %v644_v36 }
 0x10f   :  { %v645_v40 = vmax.f32 %v641_v38, 0.0 }
 0x111   :  { %1246 = vmatmul.mubr.msk.f32.vlgmr.msra.gmra.mxu1 %vm669_vm2, %v645_v40 }
 0x112   :  { %1249 = vmatpush3.msra.mxu1 %v1099_v6 }
 0x113   :  { %1250 = vmatprep.subr.mxu1 %v1098_v41 }
 0x114   :  { %1251 = vmatpush3.msra.mxu1 %v1098_v41 }
 0x115   :  { %1252 = vmatprep.subr.mxu1 %v1095_v42 }
 0x116   :  { %1253 = vmatpush3.msra.mxu1 %v1095_v42 }
 0x117   :  { %1254 = vmatprep.subr.mxu1 %v1094_v43 }
 0x118   :  { %1255 = vmatpush3.msra.mxu1 %v1094_v43 }
 0x119   :  { %1256 = vmatprep.subr.mxu1 %v1091_v45 }
 0x11a   :  { %1257 = vmatpush3.msra.mxu1 %v1091_v45 }
 0x11b   :  { %1258 = vmatprep.subr.mxu1 %v1090_v46 }
 0x11c   :  { %1259 = vmatpush3.msra.mxu1 %v1090_v46 }
 0x11d   :  { %1260 = vmatprep.subr.mxu1 %v1087_v48 }
 0x11e   :  { %1261 = vmatpush3.msra.mxu1 %v1087_v48 }
 0x11f   :  { %1262 = vmatprep.subr.mxu1 %v1086_v49 }
 0x120   :  { %1263 = vmatpush3.msra.mxu1 %v1086_v49 }
 0x1d1   :  { %v1247_v57 = vpop.f32.mrf.mxu1 }
 0x1d2   :  { %v748_v58 = vadd.f32 %v1247_v57, %v1059_v56 }
 0x1d3   :  { %v742_v59 = vpop.f32.mrf.mxu1 }
 0x1d4   :  { %v743_v60 = vadd.f32 %v1059_v56, %v742_v59  ;;  %v752_v62 = vmax.f32 %v748_v58, 0.0 }
 0x1d6   :  { %v751_v61 = vmax.f32 %v743_v60, 0.0 }
 0x1d8   :  { %1264 = vmatprep.mubr.msk.f32.mxu1 %vm669_vm2, %v751_v61 }
 0x1d9   :  { %1265 = vmatmul.mubr.msk.f32.vlgmr.msra.gmra.mxu1 %vm669_vm2, %v752_v62 }
 0x299   :  { %v1266_v6 = vpop.f32.mrf.mxu1 }
 0x29a   :  { %v854_v7 = vadd.f32 %v1266_v6, %v1062_v5 }
 0x29b   :  { %v848_v8 = vpop.f32.mrf.mxu1 }
 0x29c   :  { %v849_v9 = vadd.f32 %v1062_v5, %v848_v8  ;;  %v858_v11 = vmax.f32 %v854_v7, 0.0 }
 0x29e   :  { %v857_v10 = vmax.f32 %v849_v9, 0.0 }
 0x2a0   :  { %1283 = vmatprep.mubr.msk.f32.mxu0 %vm669_vm2, %v857_v10 }
 0x2a1   :  { %1284 = vmatmul.mubr.msk.f32.vlgmr.msra.gmra.mxu0 %vm669_vm2, %v858_v11 }
 0x361   :  { %v1285_v12 = vpop.f32.mrf.mxu0 }
 0x362   :  { %v960_v16 = vadd.f32 %v1285_v12, %v1065_v13 }
 0x363   :  { %v954_v14 = vpop.f32.mrf.mxu0 }
 0x364   :  { %v955_v15 = vadd.f32 %v1065_v13, %v954_v14 }
 0x366   :  { %963 = vmax.xlane.f32.xlu0 %v955_v15 }
 0x36a   :  { %965 = vmax.xlane.f32.xlu0 %v960_v16 }
 0x3ef   :  { %v964_v17 = vpop.xlane.xlu0 %963 }
 0x3f0   :  { %v967_v18 = vsub.f32 %v955_v15, %v964_v17 }
 0x3f2   :  { %v969_v19 = vmul.f32 1.442695, %v967_v18 }
 0x3f3   :  { %v966_v20 = vpop.xlane.xlu0 %965 }
 0x3f4   :  { %v968_v21 = vsub.f32 %v960_v16, %v966_v20  ;;  %1350 = vpow2.f32 %v969_v19 }
 0x3f6   :  { %v971_v22 = vmul.f32 1.442695, %v968_v21 }
 0x3f8   :  { %1352 = vpow2.f32 %v971_v22 }
 0x401   :  { %v1351_v23 = vpop.eup %1350 }
 0x402   :  { %973 = vadd.xlane.f32.xlu1 %v1351_v23 }
 0x405   :  { %v1353_v24 = vpop.eup %1352 }
 0x406   :  { %975 = vadd.xlane.f32.xlu1 %v1353_v24 }
 0x48b   :  { %v974_v25 = vpop.xlane.xlu1 %973 }
 0x48c   :  { %1354 = vlog2.f32 %v974_v25 }
 0x48f   :  { %v976_v26 = vpop.xlane.xlu1 %975 }
 0x490   :  { %1356 = vlog2.f32 %v976_v26 }
 0x499   :  { %v1355_v27 = vpop.eup %1354 }
 0x49a   :  { %v978_v28 = vmul.f32 0.6931472, %v1355_v27 }
 0x49c   :  { %v981_v29 = vsub.f32 %v967_v18, %v978_v28 }
 0x49d   :  { %v1357_v30 = vpop.eup %1356 }
 0x49e   :  { %983 = vst [vmem:[#allocation2] sm:$0xff] %v981_v29  ;;  %v980_v31 = vmul.f32 0.6931472, %v1357_v30 }
 0x4a0   :  { %v982_v32 = vsub.f32 %v968_v21, %v980_v31 }
 0x4a2   :  { %984 = vst [vmem:[#allocation2 + $0x8] sm:$0xff] %v982_v32 }
 0x4a3   :  { %1369 = shalt.err (!%p1366_p4)
}
 0x4a4   :  { %s1383_s1 = smov 128   ;;  %s1384_s20 = smov 8  }
 0x4a5   :  { %996 = dma.vmem_to_hbm [thread:$0]  %s991_s8, 256, %s1669_s9, [#allocation3], %s1383_s1, %s1383_s1, %s1384_s20  }
 0x4a6   :  { %1378 = dma.done.wait [#allocation3], 256  }
 0x4a7   :  { %1379 = vsyncadd [#allocation3], 4294967040 }
 0x4a8   :  { %1000 = vsyncpa [#allocation3], 1 }

</bundles_post_ra>
